<compile_context>
chip_gen: v7x
topology: tpu7x:2x2x1
jax: 0.10.0
libtpu: 0.0.40
codegen_flags: <defaults>
</compile_context>

<pallas_src>
import jax
import jax.numpy as jnp
from jax.experimental import pallas as pl
from jax.experimental.pallas import tpu as pltpu


def _round_up(x, m):
    return ((x + m - 1) // m) * m


def _num_tensorcores():
    """Best-effort TensorCores-per-chip (v7x: 2, v5e/v6e: 1). Defaults to 1."""
    try:
        info = pltpu.get_tpu_info()
        for name in ("num_cores", "core_count", "num_tensorcores", "tensorcore_count"):
            v = getattr(info, name, None)
            if v:
                return int(v)
    except Exception:
        pass
    try:
        v = getattr(jax.devices()[0], "num_cores", None)
        if v:
            return int(v)
    except Exception:
        pass
    return 1


def q_mlp_kernel(x_ref, w1_ref, b1_ref, w2_ref, b2_ref, w3_ref, b3_ref, out_ref):
    """Fused 3-layer MLP: relu(x@W1+b1) -> relu(.@W2+b2) -> .@W3+b3.

    Matmuls run on the MXU in bf16 with f32 accumulation; bias add / ReLU on
    the VPU in f32.  Output is stored lane-dense in bf16.
    """
    x = x_ref[...].astype(jnp.bfloat16)  # no-op if caller already feeds bf16

    h1 = jnp.dot(x, w1_ref[...], preferred_element_type=jnp.float32) + b1_ref[...]
    h1 = jnp.maximum(h1, 0.0).astype(jnp.bfloat16)            # relu, back to bf16 for MXU

    h2 = jnp.dot(h1, w2_ref[...], preferred_element_type=jnp.float32) + b2_ref[...]
    h2 = jnp.maximum(h2, 0.0).astype(jnp.bfloat16)             # relu

    q = jnp.dot(h2, w3_ref[...], preferred_element_type=jnp.float32) + b3_ref[...]
    out_ref[...] = q.astype(out_ref.dtype)                      # lane-dense [tile, 128] store


def init_q_params(key, state_dim, action_dim, hidden_dims=(256, 256)):
    """Deterministic PyTorch-Linear-style init: U(-1/sqrt(fan_in), 1/sqrt(fan_in)), f32."""
    dims = [state_dim] + list(hidden_dims) + [action_dim]
    params = []
    for fan_in, fan_out in zip(dims[:-1], dims[1:]):
        key, kw, kb = jax.random.split(key, 3)
        bound = 1.0 / jnp.sqrt(jnp.float32(fan_in))
        w = jax.random.uniform(kw, (fan_in, fan_out), jnp.float32, -bound, bound)
        b = jax.random.uniform(kb, (1, fan_out), jnp.float32, -bound, bound)
        params.extend([w, b])
    return tuple(params)


def prepare_q_params(params, compute_dtype=jnp.bfloat16, lane_pad=128):
    """One-time prep: cast weights to bf16, pad the last layer to a lane-dense width.

    Pad columns of W3/b3 are zero, so Q-value pad columns are exactly zero.
    """
    w1, b1, w2, b2, w3, b3 = params
    A = w3.shape[1]
    Ap = _round_up(max(A, lane_pad), lane_pad)
    w3p = jnp.zeros((w3.shape[0], Ap), w3.dtype).at[:, :A].set(w3)
    b3p = jnp.zeros((1, Ap), b3.dtype).at[:, :A].set(b3)
    return {
        "w1": w1.astype(compute_dtype),
        "b1": b1.astype(jnp.float32),
        "w2": w2.astype(compute_dtype),
        "b2": b2.astype(jnp.float32),
        "w3": w3p.astype(compute_dtype),
        "b3": b3p.astype(jnp.float32),
        "action_dim": A,
    }


def q_network_forward(state, prepared, action=None, *, batch_tile=2048, slice_output=True):
    """Pallas wrapper: tiles over the batch axis (masked partial last tile);
    weights are resident across the grid."""
    if action is not None:
        # state-action Q-network variant: concat on the feature axis (glue code).
        state = jnp.concatenate([state, action], axis=-1)

    w1, b1 = prepared["w1"], prepared["b1"]
    w2, b2 = prepared["w2"], prepared["b2"]
    w3, b3 = prepared["w3"], prepared["b3"]
    A = prepared["action_dim"]

    B, S = state.shape
    H1 = w1.shape[1]
    H2 = w2.shape[1]
    Ap = w3.shape[1]

    # --- batch tiling: multiple of 8; no padding of the input (partial last block
    # is masked by Mosaic).  Default 2048 rows amortizes the ~0.35 us/step cost.
    bt = max(8, min(int(batch_tile), _round_up(B, 8)))
    bt = _round_up(bt, 8)
    n_cores = _num_tensorcores()
    if n_cores >= 2 and pl.cdiv(B, bt) < n_cores and bt >= 16:
        # Multi-TensorCore chips (v7x): make at least one grid step per core.
        bt = _round_up(pl.cdiv(bt, n_cores), 8)
    grid = (pl.cdiv(B, bt),)

    rows = grid[0] * bt
    in_item = jnp.dtype(state.dtype).itemsize
    cost = pl.CostEstimate(
        flops=2 * rows * (S * H1 + H1 * H2 + H2 * Ap),
        transcendentals=0,
        bytes_accessed=(
            rows * S * in_item                              # state tiles
            + (S * H1 + H1 * H2 + H2 * Ap) * 2              # bf16 weights
            + (H1 + H2 + Ap) * 4                            # f32 biases
            + rows * Ap * 2                                 # bf16 output
        ),
    )

    out = pl.pallas_call(
        q_mlp_kernel,
        out_shape=jax.ShapeDtypeStruct((B, Ap), jnp.bfloat16),
        grid_spec=pltpu.PrefetchScalarGridSpec(
            num_scalar_prefetch=0,
            grid=grid,
            in_specs=[
                pl.BlockSpec((bt, S), lambda i: (i, 0)),    # state tile
                pl.BlockSpec((S, H1), lambda i: (0, 0)),    # W1 (grid-invariant, resident)
                pl.BlockSpec((1, H1), lambda i: (0, 0)),    # b1
                pl.BlockSpec((H1, H2), lambda i: (0, 0)),   # W2
                pl.BlockSpec((1, H2), lambda i: (0, 0)),    # b2
                pl.BlockSpec((H2, Ap), lambda i: (0, 0)),   # W3 (lane-padded)
                pl.BlockSpec((1, Ap), lambda i: (0, 0)),    # b3 (lane-padded)
            ],
            out_specs=pl.BlockSpec((bt, Ap), lambda i: (i, 0)),
        ),
        compiler_params=pltpu.CompilerParams(
            dimension_semantics=("parallel",),
            vmem_limit_bytes=64 * 1024 * 1024,  # <= physical on v5e/v6e/v7x; ~10 MB used at bt=2048
        ),
        cost_estimate=cost,
    )(state, w1, b1, w2, b2, w3, b3)

    if slice_output:
        return out[:, :A]
    return out  # lane-padded (B, 128); columns A..127 are exactly zero


def q_network_reference(state, params):
    """Pure-JAX f32 reference for sanity checking."""
    w1, b1, w2, b2, w3, b3 = params
    h = jnp.maximum(state @ w1 + b1, 0.0)
    h = jnp.maximum(h @ w2 + b2, 0.0)
    return h @ w3 + b3


if __name__ == "__main__":
    # Small shapes consistent with the module: batch=8, state_dim=32,
    # action_dim=4, hidden_dims=[256, 256] (module defaults).
    batch, state_dim, action_dim = 8, 32, 4
    hidden_dims = (256, 256)
    # bf16 matmul operands + bf16 output store (f32 accumulation) -> loose tolerance.
    ATOL = RTOL = 4e-2

    key = jax.random.PRNGKey(0)
    key, k_state = jax.random.split(key)
    state = jax.random.normal(k_state, (batch, state_dim), jnp.float32)

    raw_params = init_q_params(key, state_dim, action_dim, hidden_dims)
    prepared = prepare_q_params(raw_params)

    # 1) state-only Q-network (module's standard realization)
    q = jax.block_until_ready(q_network_forward(state, prepared))
    q_ref = q_network_reference(state, raw_params)
    assert q.shape == (batch, action_dim)
    err = float(jnp.max(jnp.abs(q.astype(jnp.float32) - q_ref)))
    assert jnp.allclose(q.astype(jnp.float32), q_ref, atol=ATOL, rtol=RTOL), err

    # 2) state-action variant (optional `action` arg -> feature-axis concat)
    key, k_act, k_sa = jax.random.split(key, 3)
    action = jax.random.normal(k_act, (batch, 4), jnp.float32)
    raw_sa = init_q_params(k_sa, state_dim + 4, 1, hidden_dims)
    prep_sa = prepare_q_params(raw_sa)
    q_sa = jax.block_until_ready(q_network_forward(state, prep_sa, action=action))
    q_sa_ref = q_network_reference(jnp.concatenate([state, action], axis=-1), raw_sa)
    assert q_sa.shape == (batch, 1)
    assert jnp.allclose(q_sa.astype(jnp.float32), q_sa_ref, atol=ATOL, rtol=RTOL)

    # 3) non-tile-multiple batch: default tile -> single masked partial block.
    key, k_big = jax.random.split(key)
    state_big = jax.random.normal(k_big, (300, state_dim), jnp.float32)
    q_big = jax.block_until_ready(q_network_forward(state_big, prepared))
    q_big_ref = q_network_reference(state_big, raw_params)
    assert q_big.shape == (300, action_dim)
    assert jnp.allclose(q_big.astype(jnp.float32), q_big_ref, atol=ATOL, rtol=RTOL)

    # 4) forced small tile: multi-step grid with a masked partial LAST block
    #    (B % bt != 0), exercising the no-jnp.pad path explicitly.
    q_big2 = jax.block_until_ready(q_network_forward(state_big, prepared, batch_tile=128))
    assert q_big2.shape == (300, action_dim)
    assert jnp.allclose(q_big2.astype(jnp.float32), q_big_ref, atol=ATOL, rtol=RTOL)

    # 5) lane-padded output path: pad columns must be exactly zero.
    q_pad = jax.block_until_ready(q_network_forward(state, prepared, slice_output=False))
    assert q_pad.shape == (batch, 128)
    assert float(jnp.max(jnp.abs(q_pad[:, action_dim:]))) == 0.0

    print("KERNEL_OK")
</pallas_src>

<mosaic_0001>
module attributes {stable_mosaic.version = 11 : i64} {
  func.func @q_mlp_kernel(%arg0: i32, %arg1: memref<8x32xf32, #tpu.memory_space<vmem>>, %arg2: memref<32x256xbf16, #tpu.memory_space<vmem>>, %arg3: memref<1x256xf32, #tpu.memory_space<vmem>>, %arg4: memref<256x256xbf16, #tpu.memory_space<vmem>>, %arg5: memref<1x256xf32, #tpu.memory_space<vmem>>, %arg6: memref<256x128xbf16, #tpu.memory_space<vmem>>, %arg7: memref<1x128xf32, #tpu.memory_space<vmem>>, %arg8: memref<8x128xbf16, #tpu.memory_space<vmem>>) attributes {dimension_semantics = [#tpu.dimension_semantics<parallel>], iteration_bounds = array<i64: 1>, scalar_prefetch = 0 : i64, scratch_operands = 0 : i64, tpu.core_type = #tpu.core_type<tc>, window_params = [{transform_indices = @transform_0, window_bounds = array<i64: 8, 32>}, {pipeline_mode = #tpu.pipeline_mode<synchronous>, transform_indices = @transform_1, window_bounds = array<i64: 32, 256>}, {pipeline_mode = #tpu.pipeline_mode<synchronous>, transform_indices = @transform_2, window_bounds = array<i64: 1, 256>}, {pipeline_mode = #tpu.pipeline_mode<synchronous>, transform_indices = @transform_3, window_bounds = array<i64: 256, 256>}, {pipeline_mode = #tpu.pipeline_mode<synchronous>, transform_indices = @transform_4, window_bounds = array<i64: 1, 256>}, {pipeline_mode = #tpu.pipeline_mode<synchronous>, transform_indices = @transform_5, window_bounds = array<i64: 256, 128>}, {pipeline_mode = #tpu.pipeline_mode<synchronous>, transform_indices = @transform_6, window_bounds = array<i64: 1, 128>}, {transform_indices = @transform_7, window_bounds = array<i64: 8, 128>}]} {
    %c0 = arith.constant 0 : index
    %c0_0 = arith.constant 0 : index
    %0 = vector.load %arg1[%c0, %c0_0] : memref<8x32xf32, #tpu.memory_space<vmem>>, vector<8x32xf32>
    %1 = arith.truncf %0 : vector<8x32xf32> to vector<8x32xbf16>
    %c0_1 = arith.constant 0 : index
    %c0_2 = arith.constant 0 : index
    %2 = vector.load %arg2[%c0_1, %c0_2] : memref<32x256xbf16, #tpu.memory_space<vmem>>, vector<32x256xbf16>
    %cst = arith.constant dense<0.000000e+00> : vector<8x256xf32>
    %3 = tpu.matmul %1, %2, %cst {dimension_numbers = #tpu.dot_dimension_numbers<[1], [0], [0], [1], [0, 0, 1, 1], [], []>} : vector<8x32xbf16>, vector<32x256xbf16>, vector<8x256xf32> -> vector<8x256xf32>
    %c0_3 = arith.constant 0 : index
    %c0_4 = arith.constant 0 : index
    %4 = vector.load %arg3[%c0_3, %c0_4] : memref<1x256xf32, #tpu.memory_space<vmem>>, vector<1x256xf32>
    %5 = vector.broadcast %4 : vector<1x256xf32> to vector<8x256xf32>
    %6 = arith.addf %3, %5 : vector<8x256xf32>
    %cst_5 = arith.constant 0.000000e+00 : f32
    %7 = vector.broadcast %cst_5 : f32 to vector<8x256xf32>
    %8 = arith.maximumf %6, %7 : vector<8x256xf32>
    %9 = arith.truncf %8 : vector<8x256xf32> to vector<8x256xbf16>
    %c0_6 = arith.constant 0 : index
    %c0_7 = arith.constant 0 : index
    %10 = vector.load %arg4[%c0_6, %c0_7] : memref<256x256xbf16, #tpu.memory_space<vmem>>, vector<256x256xbf16>
    %cst_8 = arith.constant dense<0.000000e+00> : vector<8x256xf32>
    %11 = tpu.matmul %9, %10, %cst_8 {dimension_numbers = #tpu.dot_dimension_numbers<[1], [0], [0], [1], [0, 0, 1, 1], [], []>} : vector<8x256xbf16>, vector<256x256xbf16>, vector<8x256xf32> -> vector<8x256xf32>
    %c0_9 = arith.constant 0 : index
    %c0_10 = arith.constant 0 : index
    %12 = vector.load %arg5[%c0_9, %c0_10] : memref<1x256xf32, #tpu.memory_space<vmem>>, vector<1x256xf32>
    %13 = vector.broadcast %12 : vector<1x256xf32> to vector<8x256xf32>
    %14 = arith.addf %11, %13 : vector<8x256xf32>
    %cst_11 = arith.constant 0.000000e+00 : f32
    %15 = vector.broadcast %cst_11 : f32 to vector<8x256xf32>
    %16 = arith.maximumf %14, %15 : vector<8x256xf32>
    %17 = arith.truncf %16 : vector<8x256xf32> to vector<8x256xbf16>
    %c0_12 = arith.constant 0 : index
    %c0_13 = arith.constant 0 : index
    %18 = vector.load %arg6[%c0_12, %c0_13] : memref<256x128xbf16, #tpu.memory_space<vmem>>, vector<256x128xbf16>
    %cst_14 = arith.constant dense<0.000000e+00> : vector<8x128xf32>
    %19 = tpu.matmul %17, %18, %cst_14 {dimension_numbers = #tpu.dot_dimension_numbers<[1], [0], [0], [1], [0, 0, 1, 1], [], []>} : vector<8x256xbf16>, vector<256x128xbf16>, vector<8x128xf32> -> vector<8x128xf32>
    %c0_15 = arith.constant 0 : index
    %c0_16 = arith.constant 0 : index
    %20 = vector.load %arg7[%c0_15, %c0_16] : memref<1x128xf32, #tpu.memory_space<vmem>>, vector<1x128xf32>
    %21 = vector.broadcast %20 : vector<1x128xf32> to vector<8x128xf32>
    %22 = arith.addf %19, %21 : vector<8x128xf32>
    %23 = arith.truncf %22 : vector<8x128xf32> to vector<8x128xbf16>
    %c0_17 = arith.constant 0 : index
    %c0_18 = arith.constant 0 : index
    %24 = vector.load %arg8[%c0_17, %c0_18] : memref<8x128xbf16, #tpu.memory_space<vmem>>, vector<8x128xbf16>
    tpu.vector_store %arg8[%c0_17, %c0_18], %23 {strides = array<i32>} : memref<8x128xbf16, #tpu.memory_space<vmem>>, vector<8x128xbf16>,
    return
  }
  func.func @transform_0(%arg0: i32) -> (i32, i32) {
    %c0_i32 = arith.constant 0 : i32
    %c0_i32_0 = arith.constant 0 : i32
    return %arg0, %c0_i32 : i32, i32
  }
  func.func @transform_1(%arg0: i32) -> (i32, i32) {
    %c0_i32 = arith.constant 0 : i32
    %c0_i32_0 = arith.constant 0 : i32
    %c0_i32_1 = arith.constant 0 : i32
    return %c0_i32, %c0_i32_0 : i32, i32
  }
  func.func @transform_2(%arg0: i32) -> (i32, i32) {
    %c0_i32 = arith.constant 0 : i32
    %c0_i32_0 = arith.constant 0 : i32
    %c0_i32_1 = arith.constant 0 : i32
    return %c0_i32, %c0_i32_0 : i32, i32
  }
  func.func @transform_3(%arg0: i32) -> (i32, i32) {
    %c0_i32 = arith.constant 0 : i32
    %c0_i32_0 = arith.constant 0 : i32
    %c0_i32_1 = arith.constant 0 : i32
    return %c0_i32, %c0_i32_0 : i32, i32
  }
  func.func @transform_4(%arg0: i32) -> (i32, i32) {
    %c0_i32 = arith.constant 0 : i32
    %c0_i32_0 = arith.constant 0 : i32
    %c0_i32_1 = arith.constant 0 : i32
    return %c0_i32, %c0_i32_0 : i32, i32
  }
  func.func @transform_5(%arg0: i32) -> (i32, i32) {
    %c0_i32 = arith.constant 0 : i32
    %c0_i32_0 = arith.constant 0 : i32
    %c0_i32_1 = arith.constant 0 : i32
    return %c0_i32, %c0_i32_0 : i32, i32
  }
  func.func @transform_6(%arg0: i32) -> (i32, i32) {
    %c0_i32 = arith.constant 0 : i32
    %c0_i32_0 = arith.constant 0 : i32
    %c0_i32_1 = arith.constant 0 : i32
    return %c0_i32, %c0_i32_0 : i32, i32
  }
  func.func @transform_7(%arg0: i32) -> (i32, i32) {
    %c0_i32 = arith.constant 0 : i32
    %c0_i32_0 = arith.constant 0 : i32
    return %arg0, %c0_i32 : i32, i32
  }
}

</mosaic_0001>

<bundles_post_ra>
// kernel: tpu_custom_call.1
= control target key start
LH: loop header
LB: loop body
LE: loop exit
PB: predicated region body
PF: predicated region fallthrough
CT: control target
= control target key end

     0   :  { %12 = vsyncpa [#allocation3], 0  ;;  %s1140_s0 = inlined_call_operand.hbm [shape: f32[8,32], index: 0, kind: input, shape index: {}]   ;;  %s1141_s1 = inlined_call_operand.hbm [shape: bf16[32,256], index: 1, kind: input, shape index: {}]   ;;  %s1142_s2 = inlined_call_operand.hbm [shape: f32[1,256], index: 2, kind: input, shape index: {}]   ;;  %s1143_s3 = inlined_call_operand.hbm [shape: bf16[256,256], index: 3, kind: input, shape index: {}]   ;;  %s1144_s4 = inlined_call_operand.hbm [shape: f32[1,256], index: 4, kind: input, shape index: {}]   ;;  %s1145_s5 = inlined_call_operand.hbm [shape: bf16[256,128], index: 5, kind: input, shape index: {}]   ;;  %s1146_s6 = inlined_call_operand.hbm [shape: f32[1,128], index: 6, kind: input, shape index: {}]   ;;  %s1147_s7 = inlined_call_operand.hbm [shape: bf16[8,128], index: 7, kind: output, shape index: {}]  }
   0x1   :  { %13 = vsyncpa [#allocation6], 0 }
   0x2   :  { %14 = vsyncpa [#allocation9], 0 }
   0x3   :  { %15 = vsyncpa [#allocation12], 0 }
   0x4   :  { %16 = vsyncpa [#allocation4], 0  ;;  %s991_s24 = smov [#allocation5]   ;;  %s805_s28 = scalar_lea.hbm %s1141_s1, 512 }
   0x5   :  { %s32_s25 = sshll.u32 %s991_s24, 4  ;;  %p806_p0 = scmp.ne.s32.totalorder %s1141_s1, %s805_s28  ;;  %s33_s25 = int_to_ptr.vmem [resolvable:$true] %s32_s25 }
   0x6   :  { %p809_p1 = scmp.lt.u32.totalorder %s805_s28, %s1141_s1 }
   0x8   :  { %p811_p2 = pnand %p809_p1, %p806_p0 }
   0xa   :  { %814 = shalt.err (!%p811_p2)
}
   0xb   :  { %s815_s10 = scalar_lea.vmem %s33_s25, 512  ;;  %p820_p4 = scmp.lt.s32.totalorder %s33_s25, %s33_s25 }
   0xc   :  { %p816_p3 = scmp.ne.s32.totalorder %s33_s25, %s815_s10  ;;  %p821_p5 = scmp.lt.s32.totalorder %s815_s10, %s815_s10 }
   0xe   :  { %p822_p6 = por %p821_p5, %p820_p4 }
  0x10   :  { %p823_p7 = pnand %p822_p6, %p816_p3 }
  0x12   :  { %826 = shalt.err (!%p823_p7)
}
  0x13   :  { %s992_s11 = smov 128   ;;  %s993_s12 = smov 8  }
  0x14   :  { %38 = dma.hbm_to_vmem [thread:$0]  %s1141_s1, 512, %s33_s25, [#allocation6], %s992_s11, %s992_s11, %s993_s12  }
  0x15   :  { %s994_s15 = smov [#allocation8]   ;;  %s995_s17 = smov [#allocation11]  }
  0x16   :  { %s54_s16 = sshll.u32 %s994_s15, 4  ;;  %s76_s18 = sshll.u32 %s995_s17, 4  ;;  %s55_s16 = int_to_ptr.vmem [resolvable:$true] %s54_s16  ;;  %s77_s18 = int_to_ptr.vmem [resolvable:$true] %s76_s18 }
  0x17   :  { %s827_s21 = scalar_lea.hbm %s1143_s3, 4096 }
  0x18   :  { %p828_p8 = scmp.ne.s32.totalorder %s1143_s3, %s827_s21  ;;  %p831_p9 = scmp.lt.u32.totalorder %s827_s21, %s1143_s3 }
  0x1a   :  { %p833_p10 = pnand %p831_p9, %p828_p8 }
  0x1c   :  { %836 = shalt.err (!%p833_p10)
}
  0x1d   :  { %s837_s1 = scalar_lea.vmem %s55_s16, 4096  ;;  %p842_p12 = scmp.lt.s32.totalorder %s55_s16, %s55_s16 }
  0x1e   :  { %p838_p11 = scmp.ne.s32.totalorder %s55_s16, %s837_s1  ;;  %p843_p13 = scmp.lt.s32.totalorder %s837_s1, %s837_s1 }
  0x20   :  { %p844_p0 = por %p843_p13, %p842_p12 }
  0x22   :  { %p845_p1 = pnand %p844_p0, %p838_p11 }
  0x24   :  { %848 = shalt.err (!%p845_p1)
}
  0x25   :  { %60 = dma.hbm_to_vmem [thread:$0]  %s1143_s3, 4096, %s55_s16, [#allocation9], %s992_s11, %s992_s11, %s993_s12  }
  0x26   :  { %s849_s30 = scalar_lea.hbm %s1145_s5, 2048 }
  0x27   :  { %p850_p2 = scmp.ne.s32.totalorder %s1145_s5, %s849_s30  ;;  %p853_p3 = scmp.lt.u32.totalorder %s849_s30, %s1145_s5 }
  0x29   :  { %p855_p4 = pnand %p853_p3, %p850_p2 }
  0x2b   :  { %858 = shalt.err (!%p855_p4)
}
  0x2c   :  { %s859_s14 = scalar_lea.vmem %s77_s18, 2048  ;;  %p864_p6 = scmp.lt.s32.totalorder %s77_s18, %s77_s18 }
  0x2d   :  { %p860_p5 = scmp.ne.s32.totalorder %s77_s18, %s859_s14  ;;  %p865_p7 = scmp.lt.s32.totalorder %s859_s14, %s859_s14 }
  0x2f   :  { %p866_p8 = por %p865_p7, %p864_p6 }
  0x31   :  { %p867_p9 = pnand %p866_p8, %p860_p5 }
  0x33   :  { %870 = shalt.err (!%p867_p9)
}
  0x34   :  { %s996_s3 = smov 64   ;;  %s997_s11 = smov 4  }
  0x35   :  { %82 = dma.hbm_to_vmem [thread:$0]  %s1145_s5, 2048, %s77_s18, [#allocation12], %s996_s3, %s996_s3, %s997_s11  }
  0x36   :  { %s998_s16 = smov [#allocation2]   ;;  %s999_s19 = smov [#allocation7]  }
  0x37   :  { %s23_s17 = sshll.u32 %s998_s16, 4  ;;  %s45_s20 = sshll.u32 %s999_s19, 4  ;;  %s24_s17 = int_to_ptr.vmem [resolvable:$true] %s23_s17  ;;  %s46_s20 = int_to_ptr.vmem [resolvable:$true] %s45_s20 }
  0x38   :  { %s871_s23 = scalar_lea.hbm %s1140_s0, 128 }
  0x39   :  { %p872_p10 = scmp.ne.s32.totalorder %s1140_s0, %s871_s23  ;;  %p875_p11 = scmp.lt.u32.totalorder %s871_s23, %s1140_s0 }
  0x3b   :  { %p877_p12 = pnand %p875_p11, %p872_p10 }
  0x3d   :  { %880 = shalt.err (!%p877_p12)
}
  0x3e   :  { %s881_s5 = scalar_lea.vmem %s24_s17, 128  ;;  %p886_p0 = scmp.lt.s32.totalorder %s24_s17, %s24_s17 }
  0x3f   :  { %p882_p13 = scmp.ne.s32.totalorder %s24_s17, %s881_s5  ;;  %p887_p1 = scmp.lt.s32.totalorder %s881_s5, %s881_s5 }
  0x41   :  { %p888_p2 = por %p887_p1, %p886_p0 }
  0x43   :  { %p889_p3 = pnand %p888_p2, %p882_p13 }
  0x45   :  { %892 = shalt.err (!%p889_p3)
}
  0x46   :  { %26 = dma.hbm_to_vmem [thread:$0]  %s1140_s0, 128, %s24_s17, [#allocation3]  }
  0x47   :  { %s893_s30 = scalar_lea.hbm %s1142_s2, 32 }
  0x48   :  { %p894_p4 = scmp.ne.s32.totalorder %s1142_s2, %s893_s30  ;;  %p897_p5 = scmp.lt.u32.totalorder %s893_s30, %s1142_s2 }
  0x4a   :  { %p899_p6 = pnand %p897_p5, %p894_p4 }
  0x4c   :  { %902 = shalt.err (!%p899_p6)
}
  0x4d   :  { %s903_s14 = scalar_lea.vmem %s46_s20, 32  ;;  %p908_p8 = scmp.lt.s32.totalorder %s46_s20, %s46_s20 }
  0x4e   :  { %p904_p7 = scmp.ne.s32.totalorder %s46_s20, %s903_s14  ;;  %p909_p9 = scmp.lt.s32.totalorder %s903_s14, %s903_s14 }
  0x50   :  { %p910_p10 = por %p909_p9, %p908_p8 }
  0x52   :  { %p911_p11 = pnand %p910_p10, %p904_p7 }
  0x54   :  { %914 = shalt.err (!%p911_p11)
}
  0x55   :  { %48 = dma.hbm_to_vmem [thread:$0]  %s1142_s2, 32, %s46_s20, [#allocation6]  }
  0x56   :  { %s1000_s11 = smov [#allocation10]   ;;  %s1001_s15 = smov [#allocation13]  }
  0x57   :  { %s67_s12 = sshll.u32 %s1000_s11, 4  ;;  %s89_s16 = sshll.u32 %s1001_s15, 4  ;;  %s68_s12 = int_to_ptr.vmem [resolvable:$true] %s67_s12  ;;  %s90_s16 = int_to_ptr.vmem [resolvable:$true] %s89_s16 }
  0x58   :  { %s915_s21 = scalar_lea.hbm %s1144_s4, 32 }
  0x59   :  { %p916_p12 = scmp.ne.s32.totalorder %s1144_s4, %s915_s21  ;;  %p919_p13 = scmp.lt.u32.totalorder %s915_s21, %s1144_s4 }
  0x5b   :  { %p921_p0 = pnand %p919_p13, %p916_p12 }
  0x5d   :  { %924 = shalt.err (!%p921_p0)
}
  0x5e   :  { %s925_s2 = scalar_lea.vmem %s68_s12, 32  ;;  %p930_p2 = scmp.lt.s32.totalorder %s68_s12, %s68_s12 }
  0x5f   :  { %p926_p1 = scmp.ne.s32.totalorder %s68_s12, %s925_s2  ;;  %p931_p3 = scmp.lt.s32.totalorder %s925_s2, %s925_s2 }
  0x61   :  { %p932_p4 = por %p931_p3, %p930_p2 }
  0x63   :  { %p933_p5 = pnand %p932_p4, %p926_p1 }
  0x65   :  { %936 = shalt.err (!%p933_p5)
}
  0x66   :  { %70 = dma.hbm_to_vmem [thread:$0]  %s1144_s4, 32, %s68_s12, [#allocation9]  }
  0x67   :  { %s937_s18 = scalar_lea.hbm %s1146_s6, 16 }
  0x68   :  { %p938_p6 = scmp.ne.s32.totalorder %s1146_s6, %s937_s18  ;;  %p941_p7 = scmp.lt.u32.totalorder %s937_s18, %s1146_s6 }
  0x6a   :  { %p943_p8 = pnand %p941_p7, %p938_p6 }
  0x6c   :  { %946 = shalt.err (!%p943_p8)
}
  0x6d   :  { %s947_s8 = scalar_lea.vmem %s90_s16, 16  ;;  %s951_s9 = scalar_lea.vmem %s90_s16, 32 }
  0x6e   :  { %p948_p9 = scmp.ne.s32.totalorder %s90_s16, %s947_s8  ;;  %p952_p10 = scmp.lt.s32.totalorder %s90_s16, %s90_s16 }
  0x6f   :  { %p953_p11 = scmp.lt.s32.totalorder %s951_s9, %s947_s8 }
  0x71   :  { %p954_p12 = por %p953_p11, %p952_p10 }
  0x73   :  { %p955_p13 = pnand %p954_p12, %p948_p9 }
  0x75   :  { %958 = shalt.err (!%p955_p13)
}
  0x76   :  { %92 = dma.hbm_to_vmem [thread:$0]  %s1146_s6, 16, %s90_s16, [#allocation12]  }
  0x77   :  { %981 = dma.done.wait [#allocation3], 128  }
  0x78   :  { %982 = vsyncadd [#allocation3], 4294967168 }
  0x79   :  { %983 = dma.done.wait [#allocation6], 544  }
  0x7a   :  { %984 = vsyncadd [#allocation6], 4294966752 }
  0x7b   :  { %985 = dma.done.wait [#allocation9], 4128  }
  0x7c   :  { %986 = vsyncadd [#allocation9], 4294963168 }
  0x7d   :  { %987 = dma.done.wait [#allocation12], 2064  }
  0x7e   :  { %988 = vsyncadd [#allocation12], 4294965232  ;;  %v1002_v0 = vmov 0   ;;  %v735_v1 = vld [vmem:[#allocation5 + $0x4] ss:$8 sps:$4 sm:$0xff]   ;;  %v115_v5 = vld [vmem:[#allocation2] sm:$0xff]  ;;  %v123_v51 = vlaneseq }
  0x7f   :  { %189 = vmatprep.mubr.bf16.mxu0 %v1002_v0  ;;  %v737_v2 = vld [vmem:[#allocation5] ss:$8 sps:$4 sm:$0xff]   ;;  %157 = vmatprep.subr.bf16.mxu0 %v735_v1  ;;  %v738_v3 = vld [vmem:[#allocation5 + $0x14] ss:$8 sps:$4 sm:$0xff]   ;;  %v740_v4 = vld [vmem:[#allocation5 + $0x10] ss:$8 sps:$4 sm:$0xff]   ;;  %v116_v9 = vpack.c.bf16 %v115_v5, %v115_v5 }
  0x80   :  { %158 = vmatpush1.bf16.msra.mxu0 %v737_v2  ;;  %v741_v6 = vld [vmem:[#allocation8 + $0x4] ss:$8 sps:$4 sm:$0xff]   ;;  %v743_v7 = vld [vmem:[#allocation8] ss:$8 sps:$4 sm:$0xff]   ;;  %v744_v8 = vld [vmem:[#allocation8 + $0x14] ss:$8 sps:$4 sm:$0xff]  }
  0x81   :  { %159 = vmatprep.subr.bf16.mxu0 %v738_v3  ;;  %406 = vmatprep.subr.bf16.mxu1 %v741_v6  ;;  %v746_v10 = vld [vmem:[#allocation8 + $0x10] ss:$8 sps:$4 sm:$0xff]   ;;  %vm153_vm0 = vcmask 261120   ;;  %v747_v11 = vld [vmem:[#allocation8 + $0x24] ss:$8 sps:$4 sm:$0xff]   ;;  %v124_v52 = vshrl.u32 %v123_v51, 7 }
  0x82   :  { %407 = vmatpush1.bf16.msra.mxu1 %v743_v7  ;;  %v749_v12 = vld [vmem:[#allocation8 + $0x20] ss:$8 sps:$4 sm:$0xff]   ;;  %v750_v13 = vld [vmem:[#allocation8 + $0x34] ss:$8 sps:$4 sm:$0xff]   ;;  %v752_v14 = vld [vmem:[#allocation8 + $0x30] ss:$8 sps:$4 sm:$0xff]  }
  0x83   :  { %408 = vmatprep.subr.bf16.mxu1 %v744_v8  ;;  %v753_v15 = vld [vmem:[#allocation8 + $0x44] ss:$8 sps:$4 sm:$0xff]   ;;  %v755_v16 = vld [vmem:[#allocation8 + $0x40] ss:$8 sps:$4 sm:$0xff]   ;;  %v756_v17 = vld [vmem:[#allocation8 + $0x54] ss:$8 sps:$4 sm:$0xff]  }
  0x84   :  { %160 = vmatpush1.bf16.msra.mxu0 %v740_v4  ;;  %v758_v18 = vld [vmem:[#allocation8 + $0x50] ss:$8 sps:$4 sm:$0xff]   ;;  %v759_v19 = vld [vmem:[#allocation8 + $0x64] ss:$8 sps:$4 sm:$0xff]   ;;  %v761_v20 = vld [vmem:[#allocation8 + $0x60] ss:$8 sps:$4 sm:$0xff]  }
  0x85   :  { %v762_v21 = vld [vmem:[#allocation8 + $0x74] ss:$8 sps:$4 sm:$0xff]   ;;  %v764_v22 = vld [vmem:[#allocation8 + $0x70] ss:$8 sps:$4 sm:$0xff]   ;;  %v765_v23 = vld [vmem:[#allocation8 + $0x84] ss:$8 sps:$4 sm:$0xff]  }
  0x86   :  { %409 = vmatpush1.bf16.msra.mxu1 %v746_v10  ;;  %v767_v24 = vld [vmem:[#allocation8 + $0x80] ss:$8 sps:$4 sm:$0xff]   ;;  %v768_v25 = vld [vmem:[#allocation8 + $0x94] ss:$8 sps:$4 sm:$0xff]   ;;  %v770_v26 = vld [vmem:[#allocation8 + $0x90] ss:$8 sps:$4 sm:$0xff]  }
  0x87   :  { %650 = vmatmul.mubr.msk.bf16.vlgmr.msra.gmra.mrb[0].mxu0 %vm153_vm0, %v116_v9  ;;  %410 = vmatprep.subr.bf16.mxu1 %v747_v11  ;;  %v771_v27 = vld [vmem:[#allocation8 + $0xa4] ss:$8 sps:$4 sm:$0xff]   ;;  %v773_v28 = vld [vmem:[#allocation8 + $0xa0] ss:$8 sps:$4 sm:$0xff]   ;;  %v774_v29 = vld [vmem:[#allocation8 + $0xb4] ss:$8 sps:$4 sm:$0xff]  }
  0x88   :  { %v776_v30 = vld [vmem:[#allocation8 + $0xb0] ss:$8 sps:$4 sm:$0xff]   ;;  %v777_v31 = vld [vmem:[#allocation8 + $0xc4] ss:$8 sps:$4 sm:$0xff]   ;;  %v779_v32 = vld [vmem:[#allocation8 + $0xc0] ss:$8 sps:$4 sm:$0xff]  }
  0x89   :  { %v780_v33 = vld [vmem:[#allocation8 + $0xd4] ss:$8 sps:$4 sm:$0xff]   ;;  %v782_v34 = vld [vmem:[#allocation8 + $0xd0] ss:$8 sps:$4 sm:$0xff]   ;;  %v783_v35 = vld [vmem:[#allocation8 + $0xe4] ss:$8 sps:$4 sm:$0xff]  }
  0x8a   :  { %411 = vmatpush1.bf16.msra.mxu1 %v749_v12  ;;  %v785_v36 = vld [vmem:[#allocation8 + $0xe0] ss:$8 sps:$4 sm:$0xff]   ;;  %v786_v37 = vld [vmem:[#allocation8 + $0xf4] ss:$8 sps:$4 sm:$0xff]   ;;  %v788_v38 = vld [vmem:[#allocation8 + $0xf0] ss:$8 sps:$4 sm:$0xff]  }
  0x8b   :  { %412 = vmatprep.subr.bf16.mxu1 %v750_v13  ;;  %v789_v39 = vld [vmem:[#allocation11 + $0x40] sm:$0xff]   ;;  %v791_v41 = vld [vmem:[#allocation11 + $0x48] sm:$0xff]   ;;  %v793_v43 = vld [vmem:[#allocation11 + $0x50] sm:$0xff]   ;;  %v125_v53 = vsub.s32 0, %v124_v52  ;;  %v129_v55 = vsub.s32 1, %v124_v52  ;;  %s1003_s6 = smov [#allocation14]  }
  0x8c   :  { %v790_v40 = vld [vmem:[#allocation11] sm:$0xff]   ;;  %700 = vmatprep.subr.bf16.mxu0 %v789_v39  ;;  %v792_v42 = vld [vmem:[#allocation11 + $0x8] sm:$0xff]   ;;  %v794_v44 = vld [vmem:[#allocation11 + $0x10] sm:$0xff]   ;;  %s634_s13 = sshll.u32 %s1003_s6, 4  ;;  %s635_s13 = int_to_ptr.vmem [resolvable:$true] %s634_s13 }
  0x8d   :  { %701 = vmatpush3.bf16.msra.mxu0 %v790_v40  ;;  %v795_v45 = vld [vmem:[#allocation11 + $0x58] sm:$0xff]   ;;  %v797_v47 = vld [vmem:[#allocation11 + $0x60] sm:$0xff]   ;;  %v799_v49 = vld [vmem:[#allocation11 + $0x68] sm:$0xff]   ;;  %s959_s14 = scalar_lea.vmem %s635_s13, 64  ;;  %p964_p1 = scmp.lt.s32.totalorder %s635_s13, %s635_s13 }
  0x8e   :  { %413 = vmatpush1.bf16.msra.mxu1 %v752_v14  ;;  %702 = vmatprep.subr.bf16.mxu0 %v791_v41  ;;  %v796_v46 = vld [vmem:[#allocation11 + $0x18] sm:$0xff]   ;;  %v798_v48 = vld [vmem:[#allocation11 + $0x20] sm:$0xff]   ;;  %v800_v50 = vld [vmem:[#allocation11 + $0x28] sm:$0xff]   ;;  %p960_p0 = scmp.ne.s32.totalorder %s635_s13, %s959_s14  ;;  %p965_p2 = scmp.lt.s32.totalorder %s959_s14, %s959_s14 }
  0x8f   :  { %414 = vmatprep.subr.bf16.mxu1 %v753_v15  ;;  %v121_v54 = vld [vmem:[#allocation7] sm:$0x3]  ;;  %v801_v4 = vld [vmem:[#allocation11 + $0x70] sm:$0xff]   ;;  %v234_v8 = vld [vmem:[#allocation10] sm:$0x3] }
  0x90   :  { %v126_v56 = vrot.slane %v121_v54, %v125_v53  ;;  %v130_v57 = vrot.slane %v121_v54, %v129_v55  ;;  %v802_v5 = vld [vmem:[#allocation11 + $0x30] sm:$0xff]   ;;  %v803_v6 = vld [vmem:[#allocation11 + $0x78] sm:$0xff]   ;;  %v239_v9 = vrot.slane %v234_v8, %v125_v53  ;;  %v243_v10 = vrot.slane %v234_v8, %v129_v55  ;;  %p966_p3 = por %p965_p2, %p964_p1 }
  0x91   :  { %703 = vmatpush3.bf16.msra.mxu0 %v792_v42  ;;  %v804_v7 = vld [vmem:[#allocation11 + $0x38] sm:$0xff]  }
  0x92   :  { %415 = vmatpush1.bf16.msra.mxu1 %v755_v16  ;;  %704 = vmatprep.subr.bf16.mxu0 %v793_v43  ;;  %p967_p4 = pnand %p966_p3, %p960_p0 }
  0x93   :  { %416 = vmatprep.subr.bf16.mxu1 %v756_v17 }
  0x95   :  { %705 = vmatpush3.bf16.msra.mxu0 %v794_v44 }
  0x96   :  { %417 = vmatpush1.bf16.msra.mxu1 %v758_v18  ;;  %706 = vmatprep.subr.bf16.mxu0 %v795_v45 }
  0x97   :  { %418 = vmatprep.subr.bf16.mxu1 %v759_v19 }
  0x99   :  { %707 = vmatpush3.bf16.msra.mxu0 %v796_v46 }
  0x9a   :  { %419 = vmatpush1.bf16.msra.mxu1 %v761_v20  ;;  %708 = vmatprep.subr.bf16.mxu0 %v797_v47 }
  0x9b   :  { %420 = vmatprep.subr.bf16.mxu1 %v762_v21 }
  0x9d   :  { %709 = vmatpush3.bf16.msra.mxu0 %v798_v48 }
  0x9e   :  { %421 = vmatpush1.bf16.msra.mxu1 %v764_v22  ;;  %710 = vmatprep.subr.bf16.mxu0 %v799_v49  ;;  %v683_v22 = vld [vmem:[#allocation13] ss:$0 sm:$0xff] }
  0x9f   :  { %422 = vmatprep.subr.bf16.mxu1 %v765_v23 }
  0xa1   :  { %711 = vmatpush3.bf16.msra.mxu0 %v800_v50 }
  0xa2   :  { %423 = vmatpush1.bf16.msra.mxu1 %v767_v24  ;;  %712 = vmatprep.subr.bf16.mxu0 %v801_v4 }
  0xa3   :  { %424 = vmatprep.subr.bf16.mxu1 %v768_v25 }
  0xa5   :  { %713 = vmatpush3.bf16.msra.mxu0 %v802_v5 }
  0xa6   :  { %425 = vmatpush1.bf16.msra.mxu1 %v770_v26  ;;  %714 = vmatprep.subr.bf16.mxu0 %v803_v6 }
  0xa7   :  { %426 = vmatprep.subr.bf16.mxu1 %v771_v27 }
  0xa9   :  { %715 = vmatpush3.bf16.msra.mxu0 %v804_v7 }
  0xaa   :  { %427 = vmatpush1.bf16.msra.mxu1 %v773_v28 }
  0xab   :  { %428 = vmatprep.subr.bf16.mxu1 %v774_v29 }
  0xae   :  { %429 = vmatpush1.bf16.msra.mxu1 %v776_v30 }
  0xaf   :  { %430 = vmatprep.subr.bf16.mxu1 %v777_v31 }
  0xb2   :  { %431 = vmatpush1.bf16.msra.mxu1 %v779_v32 }
  0xb3   :  { %432 = vmatprep.subr.bf16.mxu1 %v780_v33 }
  0xb6   :  { %433 = vmatpush1.bf16.msra.mxu1 %v782_v34 }
  0xb7   :  { %434 = vmatprep.subr.bf16.mxu1 %v783_v35 }
  0xba   :  { %435 = vmatpush1.bf16.msra.mxu1 %v785_v36 }
  0xbb   :  { %436 = vmatprep.subr.bf16.mxu1 %v786_v37 }
  0xbe   :  { %437 = vmatpush1.bf16.msra.mxu1 %v788_v38 }
 0x15a   :  { %v191_v58 = vpop.f32.mrb[0].mxu0 }
 0x15b   :  { %v192_v59 = vadd.f32 %v191_v58, %v126_v56  ;;  %v193_v60 = vpop.f32.mrb[1].mxu0 }
 0x15c   :  { %v194_v61 = vadd.f32 %v193_v60, %v130_v57  ;;  %v195_v62 = vpop.f32.mrb[2].mxu0 }
 0x15d   :  { %v198_v63 = vmax.f32 %v192_v59, 0.0  ;;  %v196_v0 = vpop.f32.mrb[3].mxu0 }
 0x15e   :  { %v199_v1 = vmax.f32 %v194_v61, 0.0 }
 0x15f   :  { %v200_v3 = vpack.c.bf16 %v198_v63, %v198_v63 }
 0x160   :  { %v201_v2 = vpack.c.bf16 %v199_v1, %v199_v1 }
 0x162   :  { %438 = vmatprep.mubr.bf16.mxu1 %v201_v2 }
 0x163   :  { %439 = vmatmul.mubr.bf16.vlgmr.msra.gmra.mrb[0].mxu1 %v200_v3 }
 0x236   :  { %v440_v11 = vpop.f32.mrb[0].mxu1 }
 0x237   :  { %v441_v12 = vadd.f32 %v440_v11, %v239_v9  ;;  %v442_v13 = vpop.f32.mrb[1].mxu1 }
 0x238   :  { %v443_v14 = vadd.f32 %v442_v13, %v243_v10  ;;  %v444_v15 = vpop.f32.mrb[2].mxu1 }
 0x239   :  { %v447_v16 = vmax.f32 %v441_v12, 0.0  ;;  %v445_v17 = vpop.f32.mrb[3].mxu1 }
 0x23a   :  { %v448_v18 = vmax.f32 %v443_v14, 0.0 }
 0x23b   :  { %v449_v20 = vpack.c.bf16 %v447_v16, %v447_v16 }
 0x23c   :  { %v450_v19 = vpack.c.bf16 %v448_v18, %v448_v18 }
 0x23e   :  { %618 = vmatprep.mubr.bf16.mxu0 %v450_v19 }
 0x23f   :  { %619 = vmatmul.mubr.bf16.vlgmr.msra.gmra.mrb[4].mxu0 %v449_v20 }
 0x312   :  { %v716_v21 = vpop.f32.mrb[4].mxu0 }
 0x313   :  { %v717_v23 = vpop.f32.mrb[5].mxu0 }
 0x314   :  { %v718_v24 = vadd.f32 %v717_v23, %v716_v21  ;;  %v719_v25 = vpop.f32.mrb[6].mxu0 }
 0x315   :  { %v720_v26 = vpop.f32.mrb[7].mxu0 }
 0x316   :  { %v621_v27 = vadd.f32 %v718_v24, %v683_v22 }
 0x318   :  { %v626_v28 = vpack.c.bf16 %v621_v27, %v621_v27 }
 0x31a   :  { %627 = vst [vmem:[#allocation14] sm:$0xf] %v626_v28 }
 0x31b   :  { %970 = shalt.err (!%p967_p4)
}
 0x31c   :  { %s971_s11 = scalar_lea.hbm %s1147_s7, 64 }
 0x31d   :  { %p972_p5 = scmp.ne.s32.totalorder %s1147_s7, %s971_s11  ;;  %p975_p6 = scmp.lt.u32.totalorder %s971_s11, %s1147_s7 }
 0x31f   :  { %p977_p7 = pnand %p975_p6, %p972_p5 }
 0x321   :  { %980 = shalt.err (!%p977_p7)
}
 0x322   :  { %637 = dma.vmem_to_hbm [thread:$0]  %s635_s13, 64, %s1147_s7, [#allocation4]  }
 0x323   :  { %989 = dma.done.wait [#allocation4], 64  }
 0x324   :  { %990 = vsyncadd [#allocation4], 4294967232 }
 0x325   :  { %641 = vsyncpa [#allocation3], 1 }
 0x326   :  { %642 = vsyncpa [#allocation6], 1 }
 0x327   :  { %643 = vsyncpa [#allocation9], 1 }
 0x328   :  { %644 = vsyncpa [#allocation12], 1 }
 0x329   :  { %645 = vsyncpa [#allocation4], 1 }

</bundles_post_ra>
